<compile_context>
chip_gen: v5e
topology: v5e:2x2
jax: 0.10.0
libtpu: 0.0.40
codegen_flags: <defaults>
</compile_context>

<pallas_src>
import functools

import jax
import jax.numpy as jnp
from jax.experimental import pallas as pl
from jax.experimental.pallas import tpu as pltpu


def _encoder_kernel(x_ref, wih_ref, whh_ref, b_ref, whead_ref, bhead_ref,
                    noise_ref, rec_ref, z_ref, h_scr, c_scr):
    """Processes one time-chunk of the sequence.

    Refs (all f32):
      x_ref     : (Tc, Bp, F)   inputs for this chunk (time-major)
      wih_ref   : (F, 4H)       W_ih^T, gate columns repacked to [i, f, o, g]
      whh_ref   : (H, 4H)       W_hh^T, same gate order
      b_ref     : (1, 4H)       b_ih + b_hh, same gate order
      whead_ref : (H, 2E)       [W_mu^T | W_sigma^T]
      bhead_ref : (1, 2E)       [b_mu   | b_sigma  ]
      noise_ref : (Tc, Bp, E)   pre-sampled N(0,1) noise
      rec_ref   : (Tc, Bp, H)   output: recurrent_features
      z_ref     : (Tc, Bp, E)   output: z
      h_scr/c_scr : (Bp, H)     LSTM state, persistent across chunks
    """
    tc, bp, f = x_ref.shape
    h_dim = whh_ref.shape[0]
    e_dim = noise_ref.shape[2]

    chunk = pl.program_id(0)

    @pl.when(chunk == 0)
    def _():
        h_scr[...] = jnp.zeros_like(h_scr)
        c_scr[...] = jnp.zeros_like(c_scr)

    # ---- (1) chunk-level precompute of the input->gate contributions ----
    # No sequential dependence, so it is one big MXU matmul off the critical path.
    x_chunk = x_ref[...].reshape(tc * bp, f)                 # free (bp % 8 == 0)
    xg = (jnp.dot(x_chunk, wih_ref[...], preferred_element_type=jnp.float32)
          + b_ref[...]).reshape(tc, bp, 4 * h_dim)

    whh = whh_ref[...]                                        # hoisted weight read

    # ---- (2) sequential LSTM cell over the chunk ----
    # Tc is a trace-time constant and kept small, so a fully unrolled static
    # loop keeps h/c in vregs (no per-step scratch round-trips).
    h = h_scr[...]
    c = c_scr[...]
    for t in range(tc):
        gates = xg[t] + jnp.dot(h, whh, preferred_element_type=jnp.float32)
        # gate order is [i, f, o, g]: one sigmoid over 3H lanes, one tanh over H.
        sig = jax.nn.sigmoid(gates[:, :3 * h_dim])
        i_g = sig[:, 0 * h_dim:1 * h_dim]
        f_g = sig[:, 1 * h_dim:2 * h_dim]
        o_g = sig[:, 2 * h_dim:3 * h_dim]
        g_g = jnp.tanh(gates[:, 3 * h_dim:])
        c = f_g * c + i_g * g_g
        h = o_g * jnp.tanh(c)
        rec_ref[t] = h.astype(rec_ref.dtype)

    h_scr[...] = h
    c_scr[...] = c

    # ---- (3) heads + reparameterization, batched over the whole chunk ----
    rec2 = rec_ref[...].reshape(tc * bp, h_dim)              # free (bp % 8 == 0)
    heads = (jnp.dot(rec2, whead_ref[...], preferred_element_type=jnp.float32)
             + bhead_ref[...])                               # (Tc*Bp, 2E)
    mu = heads[:, :e_dim]
    sigma = heads[:, e_dim:]
    noise2 = noise_ref[...].reshape(tc * bp, e_dim)
    z = noise2 * sigma + mu
    z_ref[...] = z.reshape(tc, bp, e_dim).astype(z_ref.dtype)


def encoder_forward(x_btf, noise_bte, params, *, time_chunk=64):
    """Pallas Encoder forward.

    Args:
      x_btf     : (B, T, F) float32, batch-first like PyTorch.
      noise_bte : (B, T, E) float32, the N(0,1) noise the module samples.
      params    : dict with LSTM + linear weights (PyTorch shapes).
    Returns (z, mu, sigma, recurrent_features), batch-first.
    """
    B, T, F = x_btf.shape
    H = params["w_ih"].shape[0] // 4
    E = params["w_mu"].shape[0]

    # --- weight prep (static shapes; runs once under jit) ---
    # Repack PyTorch gate blocks [i, f, g, o] -> [i, f, o, g] so the three
    # sigmoid gates form one contiguous 3H slab.
    perm = jnp.concatenate([jnp.arange(0, 2 * H),
                            jnp.arange(3 * H, 4 * H),
                            jnp.arange(2 * H, 3 * H)])
    wih_t = jnp.asarray(params["w_ih"], jnp.float32).T[:, perm]          # (F, 4H)
    whh_t = jnp.asarray(params["w_hh"], jnp.float32).T[:, perm]          # (H, 4H)
    b = (jnp.asarray(params["b_ih"], jnp.float32)
         + jnp.asarray(params["b_hh"], jnp.float32))[perm].reshape(1, 4 * H)
    # mu / sigma heads fused column-wise into one matmul.
    w_heads = jnp.concatenate(
        [jnp.asarray(params["w_mu"], jnp.float32).T,
         jnp.asarray(params["w_sigma"], jnp.float32).T], axis=1)          # (H, 2E)
    b_heads = jnp.concatenate(
        [jnp.asarray(params["b_mu"], jnp.float32),
         jnp.asarray(params["b_sigma"], jnp.float32)]).reshape(1, 2 * E)  # (1, 2E)

    # --- pad batch to a full sublane group; pad time to a chunk multiple ---
    # Tc sizing: at these tiny F/H/E the VMEM footprint is negligible; for very
    # long sequences budget Tc*Bp*(F+4H+H+2E)*4B (x2 for double-buffering)
    # against the scoped VMEM limit (64 MiB physical on v7x).
    Bp = max(8, ((B + 7) // 8) * 8)
    Tc = min(time_chunk, T)
    Tp = ((T + Tc - 1) // Tc) * Tc
    n_chunks = Tp // Tc

    x_tbf = jnp.transpose(x_btf.astype(jnp.float32), (1, 0, 2))          # (T, B, F)
    noise_tbe = jnp.transpose(noise_bte.astype(jnp.float32), (1, 0, 2))  # (T, B, E)
    x_tbf = jnp.pad(x_tbf, ((0, Tp - T), (0, Bp - B), (0, 0)))
    noise_tbe = jnp.pad(noise_tbe, ((0, Tp - T), (0, Bp - B), (0, 0)))

    const2d = lambda c: (0, 0)  # noqa: E731  (weights: loaded once, never re-DMA'd)

    rec_tbh, z_tbe = pl.pallas_call(
        _encoder_kernel,
        out_shape=(
            jax.ShapeDtypeStruct((Tp, Bp, H), jnp.float32),
            jax.ShapeDtypeStruct((Tp, Bp, E), jnp.float32),
        ),
        grid_spec=pltpu.PrefetchScalarGridSpec(
            num_scalar_prefetch=0,
            grid=(n_chunks,),
            in_specs=[
                pl.BlockSpec((Tc, Bp, F), lambda c: (c, 0, 0)),   # x chunk
                pl.BlockSpec((F, 4 * H), const2d),                # W_ih^T
                pl.BlockSpec((H, 4 * H), const2d),                # W_hh^T
                pl.BlockSpec((1, 4 * H), const2d),                # bias
                pl.BlockSpec((H, 2 * E), const2d),                # [W_mu^T|W_sig^T]
                pl.BlockSpec((1, 2 * E), const2d),                # [b_mu | b_sig]
                pl.BlockSpec((Tc, Bp, E), lambda c: (c, 0, 0)),   # noise chunk
            ],
            out_specs=[
                pl.BlockSpec((Tc, Bp, H), lambda c: (c, 0, 0)),   # rec chunk
                pl.BlockSpec((Tc, Bp, E), lambda c: (c, 0, 0)),   # z chunk
            ],
            scratch_shapes=[
                pltpu.VMEM((Bp, H), jnp.float32),   # h state (carried)
                pltpu.VMEM((Bp, H), jnp.float32),   # c state (carried)
            ],
        ),
        compiler_params=pltpu.CompilerParams(
            dimension_semantics=("arbitrary",),      # chunks carry h/c state
        ),
    )(x_tbf, wih_t, whh_t, b, w_heads, b_heads, noise_tbe)

    rec = jnp.transpose(rec_tbh[:T, :B], (1, 0, 2))   # (B, T, H)
    z = jnp.transpose(z_tbe[:T, :B], (1, 0, 2))       # (B, T, E)
    mu = rec                                          # views of recurrent_features
    sigma = rec
    return z, mu, sigma, rec


# ------------------------- pure-JAX reference (sanity check) ----------------

def encoder_forward_ref(x_btf, noise_bte, params):
    B, T, F = x_btf.shape
    H = params["w_hh"].shape[1]
    wih, whh = params["w_ih"], params["w_hh"]
    b = params["b_ih"] + params["b_hh"]

    def step(carry, x_t):
        h, c = carry
        gates = x_t @ wih.T + h @ whh.T + b
        i = jax.nn.sigmoid(gates[:, 0 * H:1 * H])
        f = jax.nn.sigmoid(gates[:, 1 * H:2 * H])
        g = jnp.tanh(gates[:, 2 * H:3 * H])
        o = jax.nn.sigmoid(gates[:, 3 * H:4 * H])
        c = f * c + i * g
        h = o * jnp.tanh(c)
        return (h, c), h

    h0 = jnp.zeros((B, H), jnp.float32)
    c0 = jnp.zeros((B, H), jnp.float32)
    _, hs = jax.lax.scan(step, (h0, c0), jnp.transpose(x_btf, (1, 0, 2)))
    rec = jnp.transpose(hs, (1, 0, 2))                       # (B, T, H)
    out_mu = rec @ params["w_mu"].T + params["b_mu"]
    out_sig = rec @ params["w_sigma"].T + params["b_sigma"]
    z = noise_bte * out_sig + out_mu
    return z, rec, rec, rec


# --------------------------------- main -------------------------------------

if __name__ == "__main__":
    # Small shapes consistent with the module.
    B, T = 2, 8
    n_features = 4
    embedding_dim = 16
    H = 2 * embedding_dim        # hidden_dim = 32
    E = embedding_dim

    key = jax.random.PRNGKey(0)
    keys = jax.random.split(key, 10)
    k = 1.0 / jnp.sqrt(H)

    # Deterministic parameter init (PyTorch shapes; uniform(-1/sqrt(H), 1/sqrt(H))).
    params = {
        "w_ih": jax.random.uniform(keys[0], (4 * H, n_features), jnp.float32, -k, k),
        "w_hh": jax.random.uniform(keys[1], (4 * H, H), jnp.float32, -k, k),
        "b_ih": jax.random.uniform(keys[2], (4 * H,), jnp.float32, -k, k),
        "b_hh": jax.random.uniform(keys[3], (4 * H,), jnp.float32, -k, k),
        "w_mu": jax.random.uniform(keys[4], (E, H), jnp.float32, -k, k),
        "b_mu": jax.random.uniform(keys[5], (E,), jnp.float32, -k, k),
        "w_sigma": jax.random.uniform(keys[6], (E, H), jnp.float32, -k, k),
        "b_sigma": jax.random.uniform(keys[7], (E,), jnp.float32, -k, k),
    }
    # NOTE: lstm2 exists in __init__ but is unused in forward; intentionally omitted.

    x = jax.random.normal(keys[8], (B, T, n_features), jnp.float32)
    # The module samples fresh N(0,1) noise inside forward; we pre-sample it here
    # so the kernel is deterministic and checkable against the reference.
    noise = jax.random.normal(keys[9], (B, T, E), jnp.float32)

    fwd = jax.jit(functools.partial(encoder_forward, params=params))
    z, mu, sigma, rec = fwd(x, noise)
    jax.block_until_ready((z, mu, sigma, rec))

    z_ref, _, _, rec_ref = encoder_forward_ref(x, noise, params)
    assert z.shape == (B, T, E) and rec.shape == (B, T, H)
    assert jnp.allclose(rec, rec_ref, atol=1e-5, rtol=1e-5)
    assert jnp.allclose(z, z_ref, atol=1e-5, rtol=1e-5)

    print("KERNEL_OK")
</pallas_src>

<mosaic_0001>
module attributes {stable_mosaic.version = 11 : i64} {
  func.func @_encoder_kernel(%arg0: i32, %arg1: memref<8x8x4xf32, #tpu.memory_space<vmem>>, %arg2: memref<4x128xf32, #tpu.memory_space<vmem>>, %arg3: memref<32x128xf32, #tpu.memory_space<vmem>>, %arg4: memref<1x128xf32, #tpu.memory_space<vmem>>, %arg5: memref<32x32xf32, #tpu.memory_space<vmem>>, %arg6: memref<1x32xf32, #tpu.memory_space<vmem>>, %arg7: memref<8x8x16xf32, #tpu.memory_space<vmem>>, %arg8: memref<8x8x32xf32, #tpu.memory_space<vmem>>, %arg9: memref<8x8x16xf32, #tpu.memory_space<vmem>>, %arg10: memref<8x32xf32, #tpu.memory_space<vmem>>, %arg11: memref<8x32xf32, #tpu.memory_space<vmem>>) attributes {dimension_semantics = [#tpu.dimension_semantics<arbitrary>], iteration_bounds = array<i64: 1>, scalar_prefetch = 0 : i64, scratch_operands = 2 : i64, tpu.core_type = #tpu.core_type<tc>, window_params = [{transform_indices = @transform_0, window_bounds = array<i64: 8, 8, 4>}, {pipeline_mode = #tpu.pipeline_mode<synchronous>, transform_indices = @transform_1, window_bounds = array<i64: 4, 128>}, {pipeline_mode = #tpu.pipeline_mode<synchronous>, transform_indices = @transform_2, window_bounds = array<i64: 32, 128>}, {pipeline_mode = #tpu.pipeline_mode<synchronous>, transform_indices = @transform_3, window_bounds = array<i64: 1, 128>}, {pipeline_mode = #tpu.pipeline_mode<synchronous>, transform_indices = @transform_4, window_bounds = array<i64: 32, 32>}, {pipeline_mode = #tpu.pipeline_mode<synchronous>, transform_indices = @transform_5, window_bounds = array<i64: 1, 32>}, {transform_indices = @transform_6, window_bounds = array<i64: 8, 8, 16>}, {transform_indices = @transform_7, window_bounds = array<i64: 8, 8, 32>}, {transform_indices = @transform_8, window_bounds = array<i64: 8, 8, 16>}]} {
    %c0_i32 = arith.constant 0 : i32
    %0 = arith.cmpi eq, %arg0, %c0_i32 : i32
    %1 = arith.extui %0 : i1 to i32
    %c0_i32_0 = arith.constant 0 : i32
    %2 = arith.cmpi ne, %1, %c0_i32_0 : i32
    scf.if %2 {
      %cst_64 = arith.constant 0.000000e+00 : f32
      %215 = vector.broadcast %cst_64 : f32 to vector<8x32xf32>
      %c0_65 = arith.constant 0 : index
      %c0_66 = arith.constant 0 : index
      %216 = vector.load %arg10[%c0_65, %c0_66] : memref<8x32xf32, #tpu.memory_space<vmem>>, vector<8x32xf32>
      tpu.vector_store %arg10[%c0_65, %c0_66], %215 {strides = array<i32>} : memref<8x32xf32, #tpu.memory_space<vmem>>, vector<8x32xf32>,
      %cst_67 = arith.constant 0.000000e+00 : f32
      %217 = vector.broadcast %cst_67 : f32 to vector<8x32xf32>
      %c0_68 = arith.constant 0 : index
      %c0_69 = arith.constant 0 : index
      %218 = vector.load %arg11[%c0_68, %c0_69] : memref<8x32xf32, #tpu.memory_space<vmem>>, vector<8x32xf32>
      tpu.vector_store %arg11[%c0_68, %c0_69], %217 {strides = array<i32>} : memref<8x32xf32, #tpu.memory_space<vmem>>, vector<8x32xf32>,
    } else {
    }
    %c0 = arith.constant 0 : index
    %c0_1 = arith.constant 0 : index
    %c0_2 = arith.constant 0 : index
    %3 = vector.load %arg1[%c0, %c0_1, %c0_2] : memref<8x8x4xf32, #tpu.memory_space<vmem>>, vector<8x8x4xf32>
    %4 = vector.shape_cast %3 : vector<8x8x4xf32> to vector<64x4xf32>
    %c0_3 = arith.constant 0 : index
    %c0_4 = arith.constant 0 : index
    %5 = vector.load %arg2[%c0_3, %c0_4] : memref<4x128xf32, #tpu.memory_space<vmem>>, vector<4x128xf32>
    %cst = arith.constant dense<0.000000e+00> : vector<64x128xf32>
    %6 = tpu.matmul %4, %5, %cst {dimension_numbers = #tpu.dot_dimension_numbers<[1], [0], [0], [1], [0, 0, 1, 1], [], []>} : vector<64x4xf32>, vector<4x128xf32>, vector<64x128xf32> -> vector<64x128xf32>
    %c0_5 = arith.constant 0 : index
    %c0_6 = arith.constant 0 : index
    %7 = vector.load %arg4[%c0_5, %c0_6] : memref<1x128xf32, #tpu.memory_space<vmem>>, vector<1x128xf32>
    %8 = vector.broadcast %7 : vector<1x128xf32> to vector<64x128xf32>
    %9 = arith.addf %6, %8 : vector<64x128xf32>
    %10 = vector.shape_cast %9 : vector<64x128xf32> to vector<8x8x128xf32>
    %c0_7 = arith.constant 0 : index
    %c0_8 = arith.constant 0 : index
    %11 = vector.load %arg3[%c0_7, %c0_8] : memref<32x128xf32, #tpu.memory_space<vmem>>, vector<32x128xf32>
    %c0_9 = arith.constant 0 : index
    %c0_10 = arith.constant 0 : index
    %12 = vector.load %arg10[%c0_9, %c0_10] : memref<8x32xf32, #tpu.memory_space<vmem>>, vector<8x32xf32>
    %c0_11 = arith.constant 0 : index
    %c0_12 = arith.constant 0 : index
    %13 = vector.load %arg11[%c0_11, %c0_12] : memref<8x32xf32, #tpu.memory_space<vmem>>, vector<8x32xf32>
    %14 = vector.extract_strided_slice %10 {offsets = [0, 0, 0], sizes = [1, 8, 128], strides = [1, 1, 1]} : vector<8x8x128xf32> to vector<1x8x128xf32>
    %15 = vector.shape_cast %14 : vector<1x8x128xf32> to vector<8x128xf32>
    %cst_13 = arith.constant dense<0.000000e+00> : vector<8x128xf32>
    %16 = tpu.matmul %12, %11, %cst_13 {dimension_numbers = #tpu.dot_dimension_numbers<[1], [0], [0], [1], [0, 0, 1, 1], [], []>} : vector<8x32xf32>, vector<32x128xf32>, vector<8x128xf32> -> vector<8x128xf32>
    %17 = arith.addf %15, %16 : vector<8x128xf32>
    %18 = vector.extract_strided_slice %17 {offsets = [0, 0], sizes = [8, 96], strides = [1, 1]} : vector<8x128xf32> to vector<8x96xf32>
    %19 = arith.negf %18 : vector<8x96xf32>
    %20 = math.exp %19 : vector<8x96xf32>
    %cst_14 = arith.constant 1.000000e+00 : f32
    %21 = vector.broadcast %cst_14 : f32 to vector<8x96xf32>
    %22 = arith.addf %21, %20 : vector<8x96xf32>
    %23 = arith.divf %21, %22 : vector<8x96xf32>
    %24 = vector.extract_strided_slice %23 {offsets = [0, 0], sizes = [8, 32], strides = [1, 1]} : vector<8x96xf32> to vector<8x32xf32>
    %25 = vector.extract_strided_slice %23 {offsets = [0, 32], sizes = [8, 32], strides = [1, 1]} : vector<8x96xf32> to vector<8x32xf32>
    %26 = vector.extract_strided_slice %23 {offsets = [0, 64], sizes = [8, 32], strides = [1, 1]} : vector<8x96xf32> to vector<8x32xf32>
    %27 = vector.extract_strided_slice %17 {offsets = [0, 96], sizes = [8, 32], strides = [1, 1]} : vector<8x128xf32> to vector<8x32xf32>
    %28 = math.tanh %27 : vector<8x32xf32>
    %29 = arith.mulf %25, %13 : vector<8x32xf32>
    %30 = arith.mulf %24, %28 : vector<8x32xf32>
    %31 = arith.addf %29, %30 : vector<8x32xf32>
    %32 = math.tanh %31 : vector<8x32xf32>
    %33 = arith.mulf %26, %32 : vector<8x32xf32>
    %c0_15 = arith.constant 0 : index
    %c0_16 = arith.constant 0 : index
    %c0_17 = arith.constant 0 : index
    %34 = vector.load %arg8[%c0_15, %c0_16, %c0_17] : memref<8x8x32xf32, #tpu.memory_space<vmem>>, vector<1x8x32xf32>
    %35 = vector.shape_cast %34 : vector<1x8x32xf32> to vector<8x32xf32>
    %36 = vector.shape_cast %33 : vector<8x32xf32> to vector<1x8x32xf32>
    tpu.vector_store %arg8[%c0_15, %c0_16, %c0_17], %36 {strides = array<i32>} : memref<8x8x32xf32, #tpu.memory_space<vmem>>, vector<1x8x32xf32>,
    %37 = vector.extract_strided_slice %10 {offsets = [1, 0, 0], sizes = [1, 8, 128], strides = [1, 1, 1]} : vector<8x8x128xf32> to vector<1x8x128xf32>
    %38 = vector.shape_cast %37 : vector<1x8x128xf32> to vector<8x128xf32>
    %cst_18 = arith.constant dense<0.000000e+00> : vector<8x128xf32>
    %39 = tpu.matmul %33, %11, %cst_18 {dimension_numbers = #tpu.dot_dimension_numbers<[1], [0], [0], [1], [0, 0, 1, 1], [], []>} : vector<8x32xf32>, vector<32x128xf32>, vector<8x128xf32> -> vector<8x128xf32>
    %40 = arith.addf %38, %39 : vector<8x128xf32>
    %41 = vector.extract_strided_slice %40 {offsets = [0, 0], sizes = [8, 96], strides = [1, 1]} : vector<8x128xf32> to vector<8x96xf32>
    %42 = arith.negf %41 : vector<8x96xf32>
    %43 = math.exp %42 : vector<8x96xf32>
    %cst_19 = arith.constant 1.000000e+00 : f32
    %44 = vector.broadcast %cst_19 : f32 to vector<8x96xf32>
    %45 = arith.addf %44, %43 : vector<8x96xf32>
    %46 = arith.divf %44, %45 : vector<8x96xf32>
    %47 = vector.extract_strided_slice %46 {offsets = [0, 0], sizes = [8, 32], strides = [1, 1]} : vector<8x96xf32> to vector<8x32xf32>
    %48 = vector.extract_strided_slice %46 {offsets = [0, 32], sizes = [8, 32], strides = [1, 1]} : vector<8x96xf32> to vector<8x32xf32>
    %49 = vector.extract_strided_slice %46 {offsets = [0, 64], sizes = [8, 32], strides = [1, 1]} : vector<8x96xf32> to vector<8x32xf32>
    %50 = vector.extract_strided_slice %40 {offsets = [0, 96], sizes = [8, 32], strides = [1, 1]} : vector<8x128xf32> to vector<8x32xf32>
    %51 = math.tanh %50 : vector<8x32xf32>
    %52 = arith.mulf %48, %31 : vector<8x32xf32>
    %53 = arith.mulf %47, %51 : vector<8x32xf32>
    %54 = arith.addf %52, %53 : vector<8x32xf32>
    %55 = math.tanh %54 : vector<8x32xf32>
    %56 = arith.mulf %49, %55 : vector<8x32xf32>
    %c1 = arith.constant 1 : index
    %c0_20 = arith.constant 0 : index
    %c0_21 = arith.constant 0 : index
    %57 = vector.load %arg8[%c1, %c0_20, %c0_21] : memref<8x8x32xf32, #tpu.memory_space<vmem>>, vector<1x8x32xf32>
    %58 = vector.shape_cast %57 : vector<1x8x32xf32> to vector<8x32xf32>
    %59 = vector.shape_cast %56 : vector<8x32xf32> to vector<1x8x32xf32>
    tpu.vector_store %arg8[%c1, %c0_20, %c0_21], %59 {strides = array<i32>} : memref<8x8x32xf32, #tpu.memory_space<vmem>>, vector<1x8x32xf32>,
    %60 = vector.extract_strided_slice %10 {offsets = [2, 0, 0], sizes = [1, 8, 128], strides = [1, 1, 1]} : vector<8x8x128xf32> to vector<1x8x128xf32>
    %61 = vector.shape_cast %60 : vector<1x8x128xf32> to vector<8x128xf32>
    %cst_22 = arith.constant dense<0.000000e+00> : vector<8x128xf32>
    %62 = tpu.matmul %56, %11, %cst_22 {dimension_numbers = #tpu.dot_dimension_numbers<[1], [0], [0], [1], [0, 0, 1, 1], [], []>} : vector<8x32xf32>, vector<32x128xf32>, vector<8x128xf32> -> vector<8x128xf32>
    %63 = arith.addf %61, %62 : vector<8x128xf32>
    %64 = vector.extract_strided_slice %63 {offsets = [0, 0], sizes = [8, 96], strides = [1, 1]} : vector<8x128xf32> to vector<8x96xf32>
    %65 = arith.negf %64 : vector<8x96xf32>
    %66 = math.exp %65 : vector<8x96xf32>
    %cst_23 = arith.constant 1.000000e+00 : f32
    %67 = vector.broadcast %cst_23 : f32 to vector<8x96xf32>
    %68 = arith.addf %67, %66 : vector<8x96xf32>
    %69 = arith.divf %67, %68 : vector<8x96xf32>
    %70 = vector.extract_strided_slice %69 {offsets = [0, 0], sizes = [8, 32], strides = [1, 1]} : vector<8x96xf32> to vector<8x32xf32>
    %71 = vector.extract_strided_slice %69 {offsets = [0, 32], sizes = [8, 32], strides = [1, 1]} : vector<8x96xf32> to vector<8x32xf32>
    %72 = vector.extract_strided_slice %69 {offsets = [0, 64], sizes = [8, 32], strides = [1, 1]} : vector<8x96xf32> to vector<8x32xf32>
    %73 = vector.extract_strided_slice %63 {offsets = [0, 96], sizes = [8, 32], strides = [1, 1]} : vector<8x128xf32> to vector<8x32xf32>
    %74 = math.tanh %73 : vector<8x32xf32>
    %75 = arith.mulf %71, %54 : vector<8x32xf32>
    %76 = arith.mulf %70, %74 : vector<8x32xf32>
    %77 = arith.addf %75, %76 : vector<8x32xf32>
    %78 = math.tanh %77 : vector<8x32xf32>
    %79 = arith.mulf %72, %78 : vector<8x32xf32>
    %c2 = arith.constant 2 : index
    %c0_24 = arith.constant 0 : index
    %c0_25 = arith.constant 0 : index
    %80 = vector.load %arg8[%c2, %c0_24, %c0_25] : memref<8x8x32xf32, #tpu.memory_space<vmem>>, vector<1x8x32xf32>
    %81 = vector.shape_cast %80 : vector<1x8x32xf32> to vector<8x32xf32>
    %82 = vector.shape_cast %79 : vector<8x32xf32> to vector<1x8x32xf32>
    tpu.vector_store %arg8[%c2, %c0_24, %c0_25], %82 {strides = array<i32>} : memref<8x8x32xf32, #tpu.memory_space<vmem>>, vector<1x8x32xf32>,
    %83 = vector.extract_strided_slice %10 {offsets = [3, 0, 0], sizes = [1, 8, 128], strides = [1, 1, 1]} : vector<8x8x128xf32> to vector<1x8x128xf32>
    %84 = vector.shape_cast %83 : vector<1x8x128xf32> to vector<8x128xf32>
    %cst_26 = arith.constant dense<0.000000e+00> : vector<8x128xf32>
    %85 = tpu.matmul %79, %11, %cst_26 {dimension_numbers = #tpu.dot_dimension_numbers<[1], [0], [0], [1], [0, 0, 1, 1], [], []>} : vector<8x32xf32>, vector<32x128xf32>, vector<8x128xf32> -> vector<8x128xf32>
    %86 = arith.addf %84, %85 : vector<8x128xf32>
    %87 = vector.extract_strided_slice %86 {offsets = [0, 0], sizes = [8, 96], strides = [1, 1]} : vector<8x128xf32> to vector<8x96xf32>
    %88 = arith.negf %87 : vector<8x96xf32>
    %89 = math.exp %88 : vector<8x96xf32>
    %cst_27 = arith.constant 1.000000e+00 : f32
    %90 = vector.broadcast %cst_27 : f32 to vector<8x96xf32>
    %91 = arith.addf %90, %89 : vector<8x96xf32>
    %92 = arith.divf %90, %91 : vector<8x96xf32>
    %93 = vector.extract_strided_slice %92 {offsets = [0, 0], sizes = [8, 32], strides = [1, 1]} : vector<8x96xf32> to vector<8x32xf32>
    %94 = vector.extract_strided_slice %92 {offsets = [0, 32], sizes = [8, 32], strides = [1, 1]} : vector<8x96xf32> to vector<8x32xf32>
    %95 = vector.extract_strided_slice %92 {offsets = [0, 64], sizes = [8, 32], strides = [1, 1]} : vector<8x96xf32> to vector<8x32xf32>
    %96 = vector.extract_strided_slice %86 {offsets = [0, 96], sizes = [8, 32], strides = [1, 1]} : vector<8x128xf32> to vector<8x32xf32>
    %97 = math.tanh %96 : vector<8x32xf32>
    %98 = arith.mulf %94, %77 : vector<8x32xf32>
    %99 = arith.mulf %93, %97 : vector<8x32xf32>
    %100 = arith.addf %98, %99 : vector<8x32xf32>
    %101 = math.tanh %100 : vector<8x32xf32>
    %102 = arith.mulf %95, %101 : vector<8x32xf32>
    %c3 = arith.constant 3 : index
    %c0_28 = arith.constant 0 : index
    %c0_29 = arith.constant 0 : index
    %103 = vector.load %arg8[%c3, %c0_28, %c0_29] : memref<8x8x32xf32, #tpu.memory_space<vmem>>, vector<1x8x32xf32>
    %104 = vector.shape_cast %103 : vector<1x8x32xf32> to vector<8x32xf32>
    %105 = vector.shape_cast %102 : vector<8x32xf32> to vector<1x8x32xf32>
    tpu.vector_store %arg8[%c3, %c0_28, %c0_29], %105 {strides = array<i32>} : memref<8x8x32xf32, #tpu.memory_space<vmem>>, vector<1x8x32xf32>,
    %106 = vector.extract_strided_slice %10 {offsets = [4, 0, 0], sizes = [1, 8, 128], strides = [1, 1, 1]} : vector<8x8x128xf32> to vector<1x8x128xf32>
    %107 = vector.shape_cast %106 : vector<1x8x128xf32> to vector<8x128xf32>
    %cst_30 = arith.constant dense<0.000000e+00> : vector<8x128xf32>
    %108 = tpu.matmul %102, %11, %cst_30 {dimension_numbers = #tpu.dot_dimension_numbers<[1], [0], [0], [1], [0, 0, 1, 1], [], []>} : vector<8x32xf32>, vector<32x128xf32>, vector<8x128xf32> -> vector<8x128xf32>
    %109 = arith.addf %107, %108 : vector<8x128xf32>
    %110 = vector.extract_strided_slice %109 {offsets = [0, 0], sizes = [8, 96], strides = [1, 1]} : vector<8x128xf32> to vector<8x96xf32>
    %111 = arith.negf %110 : vector<8x96xf32>
    %112 = math.exp %111 : vector<8x96xf32>
    %cst_31 = arith.constant 1.000000e+00 : f32
    %113 = vector.broadcast %cst_31 : f32 to vector<8x96xf32>
    %114 = arith.addf %113, %112 : vector<8x96xf32>
    %115 = arith.divf %113, %114 : vector<8x96xf32>
    %116 = vector.extract_strided_slice %115 {offsets = [0, 0], sizes = [8, 32], strides = [1, 1]} : vector<8x96xf32> to vector<8x32xf32>
    %117 = vector.extract_strided_slice %115 {offsets = [0, 32], sizes = [8, 32], strides = [1, 1]} : vector<8x96xf32> to vector<8x32xf32>
    %118 = vector.extract_strided_slice %115 {offsets = [0, 64], sizes = [8, 32], strides = [1, 1]} : vector<8x96xf32> to vector<8x32xf32>
    %119 = vector.extract_strided_slice %109 {offsets = [0, 96], sizes = [8, 32], strides = [1, 1]} : vector<8x128xf32> to vector<8x32xf32>
    %120 = math.tanh %119 : vector<8x32xf32>
    %121 = arith.mulf %117, %100 : vector<8x32xf32>
    %122 = arith.mulf %116, %120 : vector<8x32xf32>
    %123 = arith.addf %121, %122 : vector<8x32xf32>
    %124 = math.tanh %123 : vector<8x32xf32>
    %125 = arith.mulf %118, %124 : vector<8x32xf32>
    %c4 = arith.constant 4 : index
    %c0_32 = arith.constant 0 : index
    %c0_33 = arith.constant 0 : index
    %126 = vector.load %arg8[%c4, %c0_32, %c0_33] : memref<8x8x32xf32, #tpu.memory_space<vmem>>, vector<1x8x32xf32>
    %127 = vector.shape_cast %126 : vector<1x8x32xf32> to vector<8x32xf32>
    %128 = vector.shape_cast %125 : vector<8x32xf32> to vector<1x8x32xf32>
    tpu.vector_store %arg8[%c4, %c0_32, %c0_33], %128 {strides = array<i32>} : memref<8x8x32xf32, #tpu.memory_space<vmem>>, vector<1x8x32xf32>,
    %129 = vector.extract_strided_slice %10 {offsets = [5, 0, 0], sizes = [1, 8, 128], strides = [1, 1, 1]} : vector<8x8x128xf32> to vector<1x8x128xf32>
    %130 = vector.shape_cast %129 : vector<1x8x128xf32> to vector<8x128xf32>
    %cst_34 = arith.constant dense<0.000000e+00> : vector<8x128xf32>
    %131 = tpu.matmul %125, %11, %cst_34 {dimension_numbers = #tpu.dot_dimension_numbers<[1], [0], [0], [1], [0, 0, 1, 1], [], []>} : vector<8x32xf32>, vector<32x128xf32>, vector<8x128xf32> -> vector<8x128xf32>
    %132 = arith.addf %130, %131 : vector<8x128xf32>
    %133 = vector.extract_strided_slice %132 {offsets = [0, 0], sizes = [8, 96], strides = [1, 1]} : vector<8x128xf32> to vector<8x96xf32>
    %134 = arith.negf %133 : vector<8x96xf32>
    %135 = math.exp %134 : vector<8x96xf32>
    %cst_35 = arith.constant 1.000000e+00 : f32
    %136 = vector.broadcast %cst_35 : f32 to vector<8x96xf32>
    %137 = arith.addf %136, %135 : vector<8x96xf32>
    %138 = arith.divf %136, %137 : vector<8x96xf32>
    %139 = vector.extract_strided_slice %138 {offsets = [0, 0], sizes = [8, 32], strides = [1, 1]} : vector<8x96xf32> to vector<8x32xf32>
    %140 = vector.extract_strided_slice %138 {offsets = [0, 32], sizes = [8, 32], strides = [1, 1]} : vector<8x96xf32> to vector<8x32xf32>
    %141 = vector.extract_strided_slice %138 {offsets = [0, 64], sizes = [8, 32], strides = [1, 1]} : vector<8x96xf32> to vector<8x32xf32>
    %142 = vector.extract_strided_slice %132 {offsets = [0, 96], sizes = [8, 32], strides = [1, 1]} : vector<8x128xf32> to vector<8x32xf32>
    %143 = math.tanh %142 : vector<8x32xf32>
    %144 = arith.mulf %140, %123 : vector<8x32xf32>
    %145 = arith.mulf %139, %143 : vector<8x32xf32>
    %146 = arith.addf %144, %145 : vector<8x32xf32>
    %147 = math.tanh %146 : vector<8x32xf32>
    %148 = arith.mulf %141, %147 : vector<8x32xf32>
    %c5 = arith.constant 5 : index
    %c0_36 = arith.constant 0 : index
    %c0_37 = arith.constant 0 : index
    %149 = vector.load %arg8[%c5, %c0_36, %c0_37] : memref<8x8x32xf32, #tpu.memory_space<vmem>>, vector<1x8x32xf32>
    %150 = vector.shape_cast %149 : vector<1x8x32xf32> to vector<8x32xf32>
    %151 = vector.shape_cast %148 : vector<8x32xf32> to vector<1x8x32xf32>
    tpu.vector_store %arg8[%c5, %c0_36, %c0_37], %151 {strides = array<i32>} : memref<8x8x32xf32, #tpu.memory_space<vmem>>, vector<1x8x32xf32>,
    %152 = vector.extract_strided_slice %10 {offsets = [6, 0, 0], sizes = [1, 8, 128], strides = [1, 1, 1]} : vector<8x8x128xf32> to vector<1x8x128xf32>
    %153 = vector.shape_cast %152 : vector<1x8x128xf32> to vector<8x128xf32>
    %cst_38 = arith.constant dense<0.000000e+00> : vector<8x128xf32>
    %154 = tpu.matmul %148, %11, %cst_38 {dimension_numbers = #tpu.dot_dimension_numbers<[1], [0], [0], [1], [0, 0, 1, 1], [], []>} : vector<8x32xf32>, vector<32x128xf32>, vector<8x128xf32> -> vector<8x128xf32>
    %155 = arith.addf %153, %154 : vector<8x128xf32>
    %156 = vector.extract_strided_slice %155 {offsets = [0, 0], sizes = [8, 96], strides = [1, 1]} : vector<8x128xf32> to vector<8x96xf32>
    %157 = arith.negf %156 : vector<8x96xf32>
    %158 = math.exp %157 : vector<8x96xf32>
    %cst_39 = arith.constant 1.000000e+00 : f32
    %159 = vector.broadcast %cst_39 : f32 to vector<8x96xf32>
    %160 = arith.addf %159, %158 : vector<8x96xf32>
    %161 = arith.divf %159, %160 : vector<8x96xf32>
    %162 = vector.extract_strided_slice %161 {offsets = [0, 0], sizes = [8, 32], strides = [1, 1]} : vector<8x96xf32> to vector<8x32xf32>
    %163 = vector.extract_strided_slice %161 {offsets = [0, 32], sizes = [8, 32], strides = [1, 1]} : vector<8x96xf32> to vector<8x32xf32>
    %164 = vector.extract_strided_slice %161 {offsets = [0, 64], sizes = [8, 32], strides = [1, 1]} : vector<8x96xf32> to vector<8x32xf32>
    %165 = vector.extract_strided_slice %155 {offsets = [0, 96], sizes = [8, 32], strides = [1, 1]} : vector<8x128xf32> to vector<8x32xf32>
    %166 = math.tanh %165 : vector<8x32xf32>
    %167 = arith.mulf %163, %146 : vector<8x32xf32>
    %168 = arith.mulf %162, %166 : vector<8x32xf32>
    %169 = arith.addf %167, %168 : vector<8x32xf32>
    %170 = math.tanh %169 : vector<8x32xf32>
    %171 = arith.mulf %164, %170 : vector<8x32xf32>
    %c6 = arith.constant 6 : index
    %c0_40 = arith.constant 0 : index
    %c0_41 = arith.constant 0 : index
    %172 = vector.load %arg8[%c6, %c0_40, %c0_41] : memref<8x8x32xf32, #tpu.memory_space<vmem>>, vector<1x8x32xf32>
    %173 = vector.shape_cast %172 : vector<1x8x32xf32> to vector<8x32xf32>
    %174 = vector.shape_cast %171 : vector<8x32xf32> to vector<1x8x32xf32>
    tpu.vector_store %arg8[%c6, %c0_40, %c0_41], %174 {strides = array<i32>} : memref<8x8x32xf32, #tpu.memory_space<vmem>>, vector<1x8x32xf32>,
    %175 = vector.extract_strided_slice %10 {offsets = [7, 0, 0], sizes = [1, 8, 128], strides = [1, 1, 1]} : vector<8x8x128xf32> to vector<1x8x128xf32>
    %176 = vector.shape_cast %175 : vector<1x8x128xf32> to vector<8x128xf32>
    %cst_42 = arith.constant dense<0.000000e+00> : vector<8x128xf32>
    %177 = tpu.matmul %171, %11, %cst_42 {dimension_numbers = #tpu.dot_dimension_numbers<[1], [0], [0], [1], [0, 0, 1, 1], [], []>} : vector<8x32xf32>, vector<32x128xf32>, vector<8x128xf32> -> vector<8x128xf32>
    %178 = arith.addf %176, %177 : vector<8x128xf32>
    %179 = vector.extract_strided_slice %178 {offsets = [0, 0], sizes = [8, 96], strides = [1, 1]} : vector<8x128xf32> to vector<8x96xf32>
    %180 = arith.negf %179 : vector<8x96xf32>
    %181 = math.exp %180 : vector<8x96xf32>
    %cst_43 = arith.constant 1.000000e+00 : f32
    %182 = vector.broadcast %cst_43 : f32 to vector<8x96xf32>
    %183 = arith.addf %182, %181 : vector<8x96xf32>
    %184 = arith.divf %182, %183 : vector<8x96xf32>
    %185 = vector.extract_strided_slice %184 {offsets = [0, 0], sizes = [8, 32], strides = [1, 1]} : vector<8x96xf32> to vector<8x32xf32>
    %186 = vector.extract_strided_slice %184 {offsets = [0, 32], sizes = [8, 32], strides = [1, 1]} : vector<8x96xf32> to vector<8x32xf32>
    %187 = vector.extract_strided_slice %184 {offsets = [0, 64], sizes = [8, 32], strides = [1, 1]} : vector<8x96xf32> to vector<8x32xf32>
    %188 = vector.extract_strided_slice %178 {offsets = [0, 96], sizes = [8, 32], strides = [1, 1]} : vector<8x128xf32> to vector<8x32xf32>
    %189 = math.tanh %188 : vector<8x32xf32>
    %190 = arith.mulf %186, %169 : vector<8x32xf32>
    %191 = arith.mulf %185, %189 : vector<8x32xf32>
    %192 = arith.addf %190, %191 : vector<8x32xf32>
    %193 = math.tanh %192 : vector<8x32xf32>
    %194 = arith.mulf %187, %193 : vector<8x32xf32>
    %c7 = arith.constant 7 : index
    %c0_44 = arith.constant 0 : index
    %c0_45 = arith.constant 0 : index
    %195 = vector.load %arg8[%c7, %c0_44, %c0_45] : memref<8x8x32xf32, #tpu.memory_space<vmem>>, vector<1x8x32xf32>
    %196 = vector.shape_cast %195 : vector<1x8x32xf32> to vector<8x32xf32>
    %197 = vector.shape_cast %194 : vector<8x32xf32> to vector<1x8x32xf32>
    tpu.vector_store %arg8[%c7, %c0_44, %c0_45], %197 {strides = array<i32>} : memref<8x8x32xf32, #tpu.memory_space<vmem>>, vector<1x8x32xf32>,
    %c0_46 = arith.constant 0 : index
    %c0_47 = arith.constant 0 : index
    %198 = vector.load %arg10[%c0_46, %c0_47] : memref<8x32xf32, #tpu.memory_space<vmem>>, vector<8x32xf32>
    tpu.vector_store %arg10[%c0_46, %c0_47], %194 {strides = array<i32>} : memref<8x32xf32, #tpu.memory_space<vmem>>, vector<8x32xf32>,
    %c0_48 = arith.constant 0 : index
    %c0_49 = arith.constant 0 : index
    %199 = vector.load %arg11[%c0_48, %c0_49] : memref<8x32xf32, #tpu.memory_space<vmem>>, vector<8x32xf32>
    tpu.vector_store %arg11[%c0_48, %c0_49], %192 {strides = array<i32>} : memref<8x32xf32, #tpu.memory_space<vmem>>, vector<8x32xf32>,
    %c0_50 = arith.constant 0 : index
    %c0_51 = arith.constant 0 : index
    %c0_52 = arith.constant 0 : index
    %200 = vector.load %arg8[%c0_50, %c0_51, %c0_52] : memref<8x8x32xf32, #tpu.memory_space<vmem>>, vector<8x8x32xf32>
    %201 = vector.shape_cast %200 : vector<8x8x32xf32> to vector<64x32xf32>
    %c0_53 = arith.constant 0 : index
    %c0_54 = arith.constant 0 : index
    %202 = vector.load %arg5[%c0_53, %c0_54] : memref<32x32xf32, #tpu.memory_space<vmem>>, vector<32x32xf32>
    %cst_55 = arith.constant dense<0.000000e+00> : vector<64x32xf32>
    %203 = tpu.matmul %201, %202, %cst_55 {dimension_numbers = #tpu.dot_dimension_numbers<[1], [0], [0], [1], [0, 0, 1, 1], [], []>} : vector<64x32xf32>, vector<32x32xf32>, vector<64x32xf32> -> vector<64x32xf32>
    %c0_56 = arith.constant 0 : index
    %c0_57 = arith.constant 0 : index
    %204 = vector.load %arg6[%c0_56, %c0_57] : memref<1x32xf32, #tpu.memory_space<vmem>>, vector<1x32xf32>
    %205 = vector.broadcast %204 : vector<1x32xf32> to vector<64x32xf32>
    %206 = arith.addf %203, %205 : vector<64x32xf32>
    %207 = vector.extract_strided_slice %206 {offsets = [0, 0], sizes = [64, 16], strides = [1, 1]} : vector<64x32xf32> to vector<64x16xf32>
    %208 = vector.extract_strided_slice %206 {offsets = [0, 16], sizes = [64, 16], strides = [1, 1]} : vector<64x32xf32> to vector<64x16xf32>
    %c0_58 = arith.constant 0 : index
    %c0_59 = arith.constant 0 : index
    %c0_60 = arith.constant 0 : index
    %209 = vector.load %arg7[%c0_58, %c0_59, %c0_60] : memref<8x8x16xf32, #tpu.memory_space<vmem>>, vector<8x8x16xf32>
    %210 = vector.shape_cast %209 : vector<8x8x16xf32> to vector<64x16xf32>
    %211 = arith.mulf %210, %208 : vector<64x16xf32>
    %212 = arith.addf %211, %207 : vector<64x16xf32>
    %213 = vector.shape_cast %212 : vector<64x16xf32> to vector<8x8x16xf32>
    %c0_61 = arith.constant 0 : index
    %c0_62 = arith.constant 0 : index
    %c0_63 = arith.constant 0 : index
    %214 = vector.load %arg9[%c0_61, %c0_62, %c0_63] : memref<8x8x16xf32, #tpu.memory_space<vmem>>, vector<8x8x16xf32>
    tpu.vector_store %arg9[%c0_61, %c0_62, %c0_63], %213 {strides = array<i32>} : memref<8x8x16xf32, #tpu.memory_space<vmem>>, vector<8x8x16xf32>,
    return
  }
  func.func @transform_0(%arg0: i32) -> (i32, i32, i32) {
    %c0_i32 = arith.constant 0 : i32
    %c0_i32_0 = arith.constant 0 : i32
    %c0_i32_1 = arith.constant 0 : i32
    return %arg0, %c0_i32, %c0_i32_0 : i32, i32, i32
  }
  func.func @transform_1(%arg0: i32) -> (i32, i32) {
    %c0_i32 = arith.constant 0 : i32
    %c0_i32_0 = arith.constant 0 : i32
    %c0_i32_1 = arith.constant 0 : i32
    return %c0_i32, %c0_i32_0 : i32, i32
  }
  func.func @transform_2(%arg0: i32) -> (i32, i32) {
    %c0_i32 = arith.constant 0 : i32
    %c0_i32_0 = arith.constant 0 : i32
    %c0_i32_1 = arith.constant 0 : i32
    return %c0_i32, %c0_i32_0 : i32, i32
  }
  func.func @transform_3(%arg0: i32) -> (i32, i32) {
    %c0_i32 = arith.constant 0 : i32
    %c0_i32_0 = arith.constant 0 : i32
    %c0_i32_1 = arith.constant 0 : i32
    return %c0_i32, %c0_i32_0 : i32, i32
  }
  func.func @transform_4(%arg0: i32) -> (i32, i32) {
    %c0_i32 = arith.constant 0 : i32
    %c0_i32_0 = arith.constant 0 : i32
    %c0_i32_1 = arith.constant 0 : i32
    return %c0_i32, %c0_i32_0 : i32, i32
  }
  func.func @transform_5(%arg0: i32) -> (i32, i32) {
    %c0_i32 = arith.constant 0 : i32
    %c0_i32_0 = arith.constant 0 : i32
    %c0_i32_1 = arith.constant 0 : i32
    return %c0_i32, %c0_i32_0 : i32, i32
  }
  func.func @transform_6(%arg0: i32) -> (i32, i32, i32) {
    %c0_i32 = arith.constant 0 : i32
    %c0_i32_0 = arith.constant 0 : i32
    %c0_i32_1 = arith.constant 0 : i32
    return %arg0, %c0_i32, %c0_i32_0 : i32, i32, i32
  }
  func.func @transform_7(%arg0: i32) -> (i32, i32, i32) {
    %c0_i32 = arith.constant 0 : i32
    %c0_i32_0 = arith.constant 0 : i32
    %c0_i32_1 = arith.constant 0 : i32
    return %arg0, %c0_i32, %c0_i32_0 : i32, i32, i32
  }
  func.func @transform_8(%arg0: i32) -> (i32, i32, i32) {
    %c0_i32 = arith.constant 0 : i32
    %c0_i32_0 = arith.constant 0 : i32
    %c0_i32_1 = arith.constant 0 : i32
    return %arg0, %c0_i32, %c0_i32_0 : i32, i32, i32
  }
}

</mosaic_0001>

<bundles_post_ra>
// kernel: encoder_forward.1
= control target key start
LH: loop header
LB: loop body
LE: loop exit
PB: predicated region body
PF: predicated region fallthrough
CT: control target
= control target key end

     0   :  { %vm73_vm0 = vcmask 1043456   ;;  %vm48_vm1 = vcmask 31744   ;;  %vm32_vm2 = vcmask 261120   ;;  %v933_v3 = vmov 0.0   ;;  %s934_s19 = smov 32   ;;  %s936_s22 = smov 112   ;;  %s1284_s1 = inlined_call_operand.vmem [shape: f32[4,128], index: 1, kind: input, shape index: {}]   ;;  %s1285_s0 = inlined_call_operand.vmem [shape: f32[8,8,4], index: 0, kind: input, shape index: {}]   ;;  %s1286_s2 = inlined_call_operand.vmem [shape: f32[32,128], index: 2, kind: input, shape index: {}]   ;;  %s1287_s3 = inlined_call_operand.vmem [shape: f32[1,128], index: 3, kind: input, shape index: {}]   ;;  %s1288_s7 = inlined_call_operand.vmem [shape: f32[8,8,32], index: 7, kind: output, shape index: {0}]   ;;  %s1289_s4 = inlined_call_operand.vmem [shape: f32[32,32], index: 4, kind: input, shape index: {}]   ;;  %s1290_s5 = inlined_call_operand.vmem [shape: f32[1,32], index: 5, kind: input, shape index: {}]   ;;  %s1291_s6 = inlined_call_operand.vmem [shape: f32[8,8,16], index: 6, kind: input, shape index: {}]   ;;  %s1292_s8 = inlined_call_operand.vmem [shape: f32[8,8,16], index: 8, kind: output, shape index: {1}]  }
   0x1   :  { %v43_v0 = vld [vmem:[%s1284_s1] sm:$0xf]  ;;  %v42_v1 = vld [vmem:[%s1285_s0 + $0x38] sm:$0xff]  ;;  %33 = vst.msk [vmem:[#allocation2] sm:$0xff] %vm32_vm2, %v933_v3  ;;  %v1000_v4 = vld [vmem:[%s1286_s2 + $0x10] sm:$0xff]  ;;  %s937_s15 = smov 96  }
   0x2   :  { %v992_v2 = vld [vmem:[%s1286_s2 + $0x18] sm:$0xff]  ;;  %857 = vmatpush.msk.msra.mxu2 %vm73_vm0, %v43_v0  ;;  %34 = vst.msk [vmem:[#allocation3] sm:$0xff] %vm32_vm2, %v933_v3  ;;  %817 = vmatpush.msk.msra.mxu0 %vm73_vm0, %v43_v0  ;;  %v35_v5 = vld [vmem:[%s1285_s0] sm:$0xff]  ;;  %v1011_v6 = vld [vmem:[%s1286_s2 + $0x8] sm:$0xff] }
   0x3   :  { %825 = vmatmul.msk.f32.vlgmr.msra.gmra.mxu2 %vm48_vm1, %v42_v1  ;;  %275 = vmatpush.msra.mxu3 %v992_v2  ;;  %v1019_v7 = vld [vmem:[%s1286_s2] sm:$0xff]  ;;  %v36_v39 = vld [vmem:[%s1285_s0 + $0x8] sm:$0xff]  ;;  %v37_v3 = vld [vmem:[%s1285_s0 + $0x10] sm:$0xff] }
   0x4   :  { %140 = vmatpush.msrb.mxu2 %v992_v2  ;;  %818 = vmatmul.msk.f32.vlgmr.msra.gmra.mxu0 %vm48_vm1, %v35_v5  ;;  %v1050_v11 = vld [vmem:[%s1287_s3] ss:$0 sm:$0xff]  ;;  %s935_s3 = smov 64  }
   0x5   :  { %276 = vmatpush.msra.mxu3 %v1000_v4  ;;  %341 = vmatpush.msra.mxu1 %v992_v2 }
   0x6   :  { %141 = vmatpush.msrb.mxu2 %v1000_v4 }
   0x7   :  { %277 = vmatpush.msra.mxu3 %v1011_v6  ;;  %342 = vmatpush.msra.mxu1 %v1000_v4 }
   0x8   :  { %142 = vmatpush.msrb.mxu2 %v1011_v6  ;;  %v122_v8 = vld [vmem:[#allocation2] sm:$0xff] }
   0x9   :  { %278 = vmatpush.msra.mxu3 %v1019_v7  ;;  %343 = vmatpush.msra.mxu1 %v1011_v6  ;;  %v123_v16 = vld [vmem:[#allocation3] sm:$0xff] }
   0xa   :  { %143 = vmatpush.msrb.mxu2 %v1019_v7 }
   0xb   :  { %473 = vmatpush.msrb.mxu3 %v992_v2  ;;  %826 = vmatmul.msk.f32.vlgmr.msrb.gmra.mxu2 %vm32_vm2, %v122_v8 }
   0xc   :  { %344 = vmatpush.msra.mxu1 %v1019_v7  ;;  %209 = vmatpush.msra.mxu2 %v992_v2 }
   0xd   :  { %474 = vmatpush.msrb.mxu3 %v1000_v4  ;;  %819 = vmatmul.msk.f32.gmra.mxu0 %vm48_vm1, %v36_v39 }
   0xe   :  { %539 = vmatpush.msrb.mxu1 %v992_v2  ;;  %210 = vmatpush.msra.mxu2 %v1000_v4 }
   0xf   :  { %475 = vmatpush.msrb.mxu3 %v1011_v6 }
  0x10   :  { %540 = vmatpush.msrb.mxu1 %v1000_v4  ;;  %211 = vmatpush.msra.mxu2 %v1011_v6 }
  0x11   :  { %476 = vmatpush.msrb.mxu3 %v1019_v7 }
  0x12   :  { %541 = vmatpush.msrb.mxu1 %v1011_v6  ;;  %212 = vmatpush.msra.mxu2 %v1019_v7 }
  0x14   :  { %407 = vmatpush.msrb.mxu2 %v992_v2  ;;  %542 = vmatpush.msrb.mxu1 %v1019_v7 }
  0x15   :  { %820 = vmatmul.msk.f32.gmra.mxu0 %vm48_vm1, %v37_v3 }
  0x16   :  { %408 = vmatpush.msrb.mxu2 %v1000_v4 }
  0x18   :  { %409 = vmatpush.msrb.mxu2 %v1011_v6 }
  0x1a   :  { %410 = vmatpush.msrb.mxu2 %v1019_v7 }
  0x81   :  { %v94_v10 = vpop.f32.mrf.mxu0 }
  0x82   :  { %v95_v12 = vadd.f32 %v1050_v11, %v94_v10 }
  0x86   :  { %v1045_v9 = vpop.f32.mrf.mxu2 }
  0x8a   :  { %v97_v41 = vpop.f32.mrf.mxu0 }
  0x8b   :  { %v98_v42 = vadd.f32 %v1050_v11, %v97_v41 }
  0x8e   :  { %v145_v13 = vpop.f32.mrf.mxu2 }
  0x8f   :  { %v148_v14 = vadd.f32 %v145_v13, %v95_v12 }
  0x91   :  { %869 = vtanh.f32 %v148_v14  ;;  %v827_v17 = vmul.f32 -1.442695, %v148_v14 }
  0x92   :  { %v100_v5 = vpop.f32.mrf.mxu0 }
  0x93   :  { %871 = vpow2.f32 %v827_v17 }
  0x97   :  { %v870_v15 = vpop.eup %869 }
  0x98   :  { %175 = vrot.lane.b32.xlu0 %v870_v15, %s934_s19 }
  0x99   :  { %v872_v18 = vpop.eup %871 }
  0x9a   :  { %v152_v19 = vadd.f32 1.0, %v872_v18 }
  0x9c   :  { %873 = vrcp.f32 %v152_v19  ;;  %v164_v25 = vand.u32 2147483648, %v152_v19  ;;  %vm158_vm4 = vweird.f32 %v152_v19  ;;  %v162_v26 = vand.u32 2147483647, %v152_v19 }
  0x9e   :  { %v165_v28 = vor.u32 1.1754944e-38, %v164_v25  ;;  %vm163_vm6 = vcmp.eq.f32.partialorder %v162_v26, 8.507059e+37 }
  0xa0   :  { %170 = vrot.lane.b32.xlu0 %v123_v16, %s934_s19 }
  0xa2   :  { %v874_v20 = vpop.eup %873 }
  0xa3   :  { %v154_v21 = vmul.f32 %v874_v20, %v152_v19  ;;  %vm159_vm3 = vweird.f32 %v874_v20 }
  0xa4   :  { %vm160_vm5 = vmor %vm158_vm4, %vm159_vm3 }
  0xa5   :  { %v155_v22 = vsub.f32 1.0, %v154_v21 }
  0xa7   :  { %v156_v23 = vmul.f32 %v874_v20, %v155_v22 }
  0xa9   :  { %v157_v24 = vadd.f32 %v874_v20, %v156_v23 }
  0xab   :  { %v161_v27 = vsel %vm160_vm5, %v874_v20, %v157_v24 }
  0xac   :  { %v166_v30 = vsel %vm163_vm6, %v165_v28, %v161_v27 }
 0x10a   :  { %v176_v29 = vpop.permute.xlu0 %175 }
 0x10b   :  { %v178_v31 = vmul.f32 %v176_v29, %v166_v30 }
 0x10d   :  { %180 = vrot.lane.b32.xlu1 %v178_v31, %s934_s19  ;;  %v38_v31 = vld [vmem:[%s1285_s0 + $0x18] sm:$0xff] }
 0x10e   :  { %821 = vmatmul.msk.f32.gmra.mxu0 %vm48_vm1, %v38_v31  ;;  %v671_v31 = vld [vmem:[%s1289_s4] sm:$0xff] }
 0x112   :  { %v171_v32 = vpop.permute.xlu0 %170 }
 0x113   :  { %v173_v33 = vmul.f32 %v171_v32, %v166_v30 }
 0x17f   :  { %v181_v34 = vpop.permute.xlu1 %180 }
 0x180   :  { %v183_v35 = vadd.f32 %v181_v34, %v173_v33 }
 0x182   :  { %875 = vtanh.f32 %v183_v35 }
 0x188   :  { %v876_v36 = vpop.eup %875 }
 0x189   :  { %186 = vrot.lane.b32.xlu1 %v876_v36, %s934_s19 }
 0x1fb   :  { %v187_v37 = vpop.permute.xlu1 %186 }
 0x1fc   :  { %v189_v38 = vmul.f32 %v187_v37, %v166_v30 }
 0x1fe   :  { %191 = vrot.lane.b32.xlu2 %v189_v38, %s935_s3 }
 0x258   :  { %v192_v40 = vpop.permute.xlu2 %191 }
 0x259   :  { %194 = vst.msk [vmem:[%s1288_s7] sm:$0xff] %vm32_vm2, %v192_v40  ;;  %828 = vmatmul.msk.f32.vlgmr.msra.gmra.mxu2 %vm32_vm2, %v192_v40 }
 0x25a   :  { %605 = vmatpush.msra.mxu2 %v992_v2 }
 0x25c   :  { %606 = vmatpush.msra.mxu2 %v1000_v4 }
 0x25e   :  { %607 = vmatpush.msra.mxu2 %v1011_v6  ;;  %v101_v6 = vadd.f32 %v1050_v11, %v100_v5 }
 0x260   :  { %608 = vmatpush.msra.mxu2 %v1019_v7 }
 0x2dc   :  { %v214_v43 = vpop.f32.mrf.mxu2 }
 0x2dd   :  { %v217_v44 = vadd.f32 %v214_v43, %v98_v42 }
 0x2df   :  { %877 = vtanh.f32 %v217_v44  ;;  %v829_v46 = vmul.f32 -1.442695, %v217_v44 }
 0x2e1   :  { %879 = vpow2.f32 %v829_v46 }
 0x2e5   :  { %v878_v45 = vpop.eup %877 }
 0x2e6   :  { %240 = vrot.lane.b32.xlu2 %v878_v45, %s934_s19 }
 0x2e7   :  { %v880_v47 = vpop.eup %879 }
 0x2e8   :  { %v221_v48 = vadd.f32 1.0, %v880_v47 }
 0x2ea   :  { %881 = vrcp.f32 %v221_v48  ;;  %v233_v54 = vand.u32 2147483648, %v221_v48  ;;  %vm227_vm8 = vweird.f32 %v221_v48  ;;  %v231_v55 = vand.u32 2147483647, %v221_v48 }
 0x2ec   :  { %v234_v57 = vor.u32 1.1754944e-38, %v233_v54  ;;  %vm232_vm10 = vcmp.eq.f32.partialorder %v231_v55, 8.507059e+37 }
 0x2f0   :  { %v882_v49 = vpop.eup %881 }
 0x2f1   :  { %v223_v50 = vmul.f32 %v882_v49, %v221_v48  ;;  %vm228_vm7 = vweird.f32 %v882_v49 }
 0x2f2   :  { %vm229_vm9 = vmor %vm227_vm8, %vm228_vm7 }
 0x2f3   :  { %v224_v51 = vsub.f32 1.0, %v223_v50 }
 0x2f5   :  { %v225_v52 = vmul.f32 %v882_v49, %v224_v51 }
 0x2f7   :  { %v226_v53 = vadd.f32 %v882_v49, %v225_v52 }
 0x2f9   :  { %v230_v56 = vsel %vm229_vm9, %v882_v49, %v226_v53 }
 0x2fa   :  { %v235_v59 = vsel %vm232_vm10, %v234_v57, %v230_v56 }
 0x2fb   :  { %v238_v61 = vmul.f32 %v235_v59, %v183_v35  ;;  %v103_v35 = vpop.f32.mrf.mxu0 }
 0x2fc   :  { %v104_v36 = vadd.f32 %v1050_v11, %v103_v35 }
 0x340   :  { %v241_v58 = vpop.permute.xlu2 %240 }
 0x341   :  { %v243_v60 = vmul.f32 %v241_v58, %v235_v59 }
 0x343   :  { %245 = vrot.lane.b32.xlu0 %v243_v60, %s934_s19 }
 0x3b5   :  { %v246_v62 = vpop.permute.xlu0 %245 }
 0x3b6   :  { %v248_v63 = vadd.f32 %v246_v62, %v238_v61  ;;  %v39_v61 = vld [vmem:[%s1285_s0 + $0x20] sm:$0xff] }
 0x3b7   :  { %822 = vmatmul.msk.f32.gmra.mxu0 %vm48_vm1, %v39_v61 }
 0x3b8   :  { %883 = vtanh.f32 %v248_v63 }
 0x3be   :  { %v884_v0 = vpop.eup %883 }
 0x3bf   :  { %251 = vrot.lane.b32.xlu1 %v884_v0, %s934_s19 }
 0x431   :  { %v252_v1 = vpop.permute.xlu1 %251 }
 0x432   :  { %v254_v2 = vmul.f32 %v252_v1, %v235_v59 }
 0x434   :  { %256 = vrot.lane.b32.xlu2 %v254_v2, %s935_s3 }
 0x48e   :  { %v257_v4 = vpop.permute.xlu2 %256 }
 0x48f   :  { %830 = vst.msk [vmem:[%s1288_s7 + $0x8] sm:$0xff] %vm32_vm2, %v257_v4  ;;  %831 = vmatmul.msk.f32.vlgmr.msra.gmra.mxu3 %vm32_vm2, %v257_v4 }
 0x512   :  { %v280_v7 = vpop.f32.mrf.mxu3 }
 0x513   :  { %v283_v8 = vadd.f32 %v280_v7, %v101_v6 }
 0x515   :  { %885 = vtanh.f32 %v283_v8  ;;  %v832_v12 = vmul.f32 -1.442695, %v283_v8 }
 0x517   :  { %887 = vpow2.f32 %v832_v12 }
 0x51b   :  { %v886_v10 = vpop.eup %885 }
 0x51c   :  { %306 = vrot.lane.b32.xlu0 %v886_v10, %s934_s19 }
 0x51d   :  { %v888_v13 = vpop.eup %887 }
 0x51e   :  { %v287_v14 = vadd.f32 1.0, %v888_v13 }
 0x520   :  { %889 = vrcp.f32 %v287_v14  ;;  %v299_v20 = vand.u32 2147483648, %v287_v14  ;;  %vm293_vm12 = vweird.f32 %v287_v14  ;;  %v297_v21 = vand.u32 2147483647, %v287_v14 }
 0x522   :  { %v300_v23 = vor.u32 1.1754944e-38, %v299_v20  ;;  %vm298_vm14 = vcmp.eq.f32.partialorder %v297_v21, 8.507059e+37 }
 0x526   :  { %v890_v15 = vpop.eup %889 }
 0x527   :  { %v289_v16 = vmul.f32 %v890_v15, %v287_v14  ;;  %vm294_vm11 = vweird.f32 %v890_v15 }
 0x528   :  { %vm295_vm13 = vmor %vm293_vm12, %vm294_vm11 }
 0x529   :  { %v290_v17 = vsub.f32 1.0, %v289_v16 }
 0x52b   :  { %v291_v18 = vmul.f32 %v890_v15, %v290_v17 }
 0x52d   :  { %v292_v19 = vadd.f32 %v890_v15, %v291_v18 }
 0x52f   :  { %v296_v22 = vsel %vm295_vm13, %v890_v15, %v292_v19 }
 0x530   :  { %v301_v25 = vsel %vm298_vm14, %v300_v23, %v296_v22 }
 0x531   :  { %v304_v27 = vmul.f32 %v301_v25, %v248_v63  ;;  %v106_v63 = vpop.f32.mrf.mxu0 }
 0x532   :  { %v107_v0 = vadd.f32 %v1050_v11, %v106_v63 }
 0x58e   :  { %v307_v24 = vpop.permute.xlu0 %306 }
 0x58f   :  { %v309_v26 = vmul.f32 %v307_v24, %v301_v25 }
 0x591   :  { %311 = vrot.lane.b32.xlu1 %v309_v26, %s934_s19 }
 0x603   :  { %v312_v28 = vpop.permute.xlu1 %311 }
 0x604   :  { %v314_v29 = vadd.f32 %v312_v28, %v304_v27  ;;  %v674_v27 = vld [vmem:[%s1289_s4 + $0x18] sm:$0xff]  ;;  %v673_v28 = vld [vmem:[%s1289_s4 + $0x10] sm:$0xff] }
 0x605   :  { %858 = vmatpush.msra.mxu3 %v674_v27 }
 0x606   :  { %891 = vtanh.f32 %v314_v29 }
 0x607   :  { %859 = vmatpush.msra.mxu3 %v673_v28 }
 0x60c   :  { %v892_v30 = vpop.eup %891 }
 0x60d   :  { %317 = vrot.lane.b32.xlu2 %v892_v30, %s934_s19  ;;  %v672_v30 = vld [vmem:[%s1289_s4 + $0x8] sm:$0xff] }
 0x60e   :  { %860 = vmatpush.msra.mxu3 %v672_v30 }
 0x610   :  { %861 = vmatpush.msra.mxu3 %v671_v31 }
 0x667   :  { %v318_v32 = vpop.permute.xlu2 %317 }
 0x668   :  { %v320_v33 = vmul.f32 %v318_v32, %v301_v25 }
 0x66a   :  { %322 = vrot.lane.b32.xlu0 %v320_v33, %s935_s3 }
 0x6dc   :  { %v323_v34 = vpop.permute.xlu0 %322 }
 0x6dd   :  { %833 = vst.msk [vmem:[%s1288_s7 + $0x10] sm:$0xff] %vm32_vm2, %v323_v34  ;;  %834 = vmatmul.msk.f32.vlgmr.msra.gmra.mxu1 %vm32_vm2, %v323_v34 }
 0x6de   :  { %715 = vmatpush.msra.mxu1 %v674_v27 }
 0x6e0   :  { %716 = vmatpush.msra.mxu1 %v673_v28 }
 0x6e2   :  { %717 = vmatpush.msra.mxu1 %v672_v30 }
 0x6e4   :  { %718 = vmatpush.msra.mxu1 %v671_v31 }
 0x75a   :  { %v346_v37 = vpop.f32.mrf.mxu1 }
 0x75b   :  { %v349_v38 = vadd.f32 %v346_v37, %v104_v36 }
 0x75d   :  { %893 = vtanh.f32 %v349_v38  ;;  %v835_v40 = vmul.f32 -1.442695, %v349_v38 }
 0x75f   :  { %895 = vpow2.f32 %v835_v40 }
 0x763   :  { %v894_v39 = vpop.eup %893 }
 0x764   :  { %372 = vrot.lane.b32.xlu1 %v894_v39, %s934_s19 }
 0x765   :  { %v896_v41 = vpop.eup %895 }
 0x766   :  { %v353_v42 = vadd.f32 1.0, %v896_v41 }
 0x768   :  { %897 = vrcp.f32 %v353_v42  ;;  %v365_v48 = vand.u32 2147483648, %v353_v42  ;;  %vm359_vm0 = vweird.f32 %v353_v42  ;;  %v363_v49 = vand.u32 2147483647, %v353_v42 }
 0x76a   :  { %v366_v51 = vor.u32 1.1754944e-38, %v365_v48  ;;  %vm364_vm4 = vcmp.eq.f32.partialorder %v363_v49, 8.507059e+37 }
 0x76e   :  { %v898_v43 = vpop.eup %897 }
 0x76f   :  { %v355_v44 = vmul.f32 %v898_v43, %v353_v42  ;;  %vm360_vm15 = vweird.f32 %v898_v43 }
 0x770   :  { %vm361_vm3 = vmor %vm359_vm0, %vm360_vm15 }
 0x771   :  { %v356_v45 = vsub.f32 1.0, %v355_v44 }
 0x773   :  { %v357_v46 = vmul.f32 %v898_v43, %v356_v45 }
 0x775   :  { %v358_v47 = vadd.f32 %v898_v43, %v357_v46 }
 0x777   :  { %v362_v50 = vsel %vm361_vm3, %v898_v43, %v358_v47 }
 0x778   :  { %v367_v53 = vsel %vm364_vm4, %v366_v51, %v362_v50 }
 0x779   :  { %v370_v55 = vmul.f32 %v367_v53, %v314_v29  ;;  %v40_v29 = vld [vmem:[%s1285_s0 + $0x28] sm:$0xff] }
 0x77a   :  { %823 = vmatmul.msk.f32.gmra.mxu0 %vm48_vm1, %v40_v29 }
 0x7d6   :  { %v373_v52 = vpop.permute.xlu1 %372 }
 0x7d7   :  { %v375_v54 = vmul.f32 %v373_v52, %v367_v53 }
 0x7d9   :  { %377 = vrot.lane.b32.xlu2 %v375_v54, %s934_s19 }
 0x7f7   :  { %v109_v34 = vpop.f32.mrf.mxu0 }
 0x7f8   :  { %v110_v35 = vadd.f32 %v1050_v11, %v109_v34 }
 0x833   :  { %v378_v56 = vpop.permute.xlu2 %377 }
 0x834   :  { %v380_v57 = vadd.f32 %v378_v56, %v370_v55 }
 0x836   :  { %899 = vtanh.f32 %v380_v57 }
 0x83c   :  { %v900_v58 = vpop.eup %899 }
 0x83d   :  { %383 = vrot.lane.b32.xlu0 %v900_v58, %s934_s19  ;;  %v41_v58 = vld [vmem:[%s1285_s0 + $0x30] sm:$0xff] }
 0x83e   :  { %824 = vmatmul.msk.f32.gmra.mxu0 %vm48_vm1, %v41_v58 }
 0x8af   :  { %v384_v59 = vpop.permute.xlu0 %383 }
 0x8b0   :  { %v386_v60 = vmul.f32 %v384_v59, %v367_v53 }
 0x8b2   :  { %388 = vrot.lane.b32.xlu1 %v386_v60, %s935_s3 }
 0x924   :  { %v389_v62 = vpop.permute.xlu1 %388 }
 0x925   :  { %836 = vst.msk [vmem:[%s1288_s7 + $0x18] sm:$0xff] %vm32_vm2, %v389_v62  ;;  %837 = vmatmul.msk.f32.vlgmr.msrb.gmra.mxu2 %vm32_vm2, %v389_v62  ;;  %v663_v62 = vld [vmem:[%s1288_s7] sm:$0xff] }
 0x9a8   :  { %v412_v1 = vpop.f32.mrf.mxu2 }
 0x9a9   :  { %v415_v2 = vadd.f32 %v412_v1, %v107_v0  ;;  %v664_v0 = vld [vmem:[%s1288_s7 + $0x8] sm:$0xff]  ;;  %v665_v1 = vld [vmem:[%s1288_s7 + $0x10] sm:$0xff] }
 0x9ab   :  { %901 = vtanh.f32 %v415_v2  ;;  %v838_v4 = vmul.f32 -1.442695, %v415_v2  ;;  %v666_v2 = vld [vmem:[%s1288_s7 + $0x18] sm:$0xff] }
 0x9ad   :  { %903 = vpow2.f32 %v838_v4 }
 0x9b1   :  { %v902_v3 = vpop.eup %901 }
 0x9b2   :  { %438 = vrot.lane.b32.xlu2 %v902_v3, %s934_s19  ;;  %v112_v3 = vpop.f32.mrf.mxu0 }
 0x9b3   :  { %v904_v5 = vpop.eup %903  ;;  %v113_v4 = vadd.f32 %v1050_v11, %v112_v3 }
 0x9b4   :  { %v419_v6 = vadd.f32 1.0, %v904_v5 }
 0x9b6   :  { %905 = vrcp.f32 %v419_v6  ;;  %v431_v14 = vand.u32 2147483648, %v419_v6  ;;  %vm425_vm6 = vweird.f32 %v419_v6  ;;  %v429_v15 = vand.u32 2147483647, %v419_v6 }
 0x9b8   :  { %v432_v17 = vor.u32 1.1754944e-38, %v431_v14  ;;  %vm430_vm8 = vcmp.eq.f32.partialorder %v429_v15, 8.507059e+37 }
 0x9bc   :  { %v906_v7 = vpop.eup %905 }
 0x9bd   :  { %v421_v8 = vmul.f32 %v906_v7, %v419_v6  ;;  %vm426_vm5 = vweird.f32 %v906_v7 }
 0x9be   :  { %vm427_vm7 = vmor %vm425_vm6, %vm426_vm5  ;;  %vm800_vm6 = vcmask 130048  }
 0x9bf   :  { %v422_v10 = vsub.f32 1.0, %v421_v8 }
 0x9c1   :  { %v423_v12 = vmul.f32 %v906_v7, %v422_v10 }
 0x9c3   :  { %v424_v13 = vadd.f32 %v906_v7, %v423_v12 }
 0x9c5   :  { %v428_v16 = vsel %vm427_vm7, %v906_v7, %v424_v13 }
 0x9c6   :  { %v433_v19 = vsel %vm430_vm8, %v432_v17, %v428_v16 }
 0x9c7   :  { %v436_v21 = vmul.f32 %v433_v19, %v380_v57 }
 0xa0c   :  { %v439_v18 = vpop.permute.xlu2 %438 }
 0xa0d   :  { %v441_v20 = vmul.f32 %v439_v18, %v433_v19 }
 0xa0f   :  { %443 = vrot.lane.b32.xlu0 %v441_v20, %s934_s19 }
 0xa81   :  { %v444_v22 = vpop.permute.xlu0 %443 }
 0xa82   :  { %v446_v23 = vadd.f32 %v444_v22, %v436_v21 }
 0xa84   :  { %907 = vtanh.f32 %v446_v23 }
 0xa8a   :  { %v908_v24 = vpop.eup %907 }
 0xa8b   :  { %449 = vrot.lane.b32.xlu1 %v908_v24, %s934_s19 }
 0xafd   :  { %v450_v25 = vpop.permute.xlu1 %449 }
 0xafe   :  { %v452_v26 = vmul.f32 %v450_v25, %v433_v19 }
 0xb00   :  { %454 = vrot.lane.b32.xlu2 %v452_v26, %s935_s3 }
 0xb5a   :  { %v455_v32 = vpop.permute.xlu2 %454 }
 0xb5b   :  { %839 = vst.msk [vmem:[%s1288_s7 + $0x20] sm:$0xff] %vm32_vm2, %v455_v32  ;;  %840 = vmatmul.msk.f32.vlgmr.msrb.gmra.mxu3 %vm32_vm2, %v455_v32 }
 0xb62   :  { %v667_v33 = vld [vmem:[%s1288_s7 + $0x20] sm:$0xff] }
 0xb63   :  { %853 = vmatmul.msk.f32.vlgmr.msra.gmra.mxu3 %vm32_vm2, %v667_v33  ;;  %v116_v33 = vadd.f32 %v1050_v11, %v1045_v9 }
 0xbde   :  { %v478_v36 = vpop.f32.mrf.mxu3 }
 0xbdf   :  { %v481_v37 = vadd.f32 %v478_v36, %v110_v35 }
 0xbe1   :  { %909 = vtanh.f32 %v481_v37  ;;  %v841_v39 = vmul.f32 -1.442695, %v481_v37 }
 0xbe3   :  { %911 = vpow2.f32 %v841_v39 }
 0xbe7   :  { %v910_v38 = vpop.eup %909 }
 0xbe8   :  { %504 = vrot.lane.b32.xlu0 %v910_v38, %s934_s19 }
 0xbe9   :  { %v912_v40 = vpop.eup %911 }
 0xbea   :  { %v485_v41 = vadd.f32 1.0, %v912_v40 }
 0xbec   :  { %913 = vrcp.f32 %v485_v41  ;;  %v497_v47 = vand.u32 2147483648, %v485_v41  ;;  %vm491_vm10 = vweird.f32 %v485_v41  ;;  %v495_v48 = vand.u32 2147483647, %v485_v41 }
 0xbee   :  { %v498_v50 = vor.u32 1.1754944e-38, %v497_v47  ;;  %vm496_vm12 = vcmp.eq.f32.partialorder %v495_v48, 8.507059e+37 }
 0xbf2   :  { %v914_v42 = vpop.eup %913 }
 0xbf3   :  { %v487_v43 = vmul.f32 %v914_v42, %v485_v41  ;;  %vm492_vm9 = vweird.f32 %v914_v42 }
 0xbf4   :  { %vm493_vm11 = vmor %vm491_vm10, %vm492_vm9 }
 0xbf5   :  { %v488_v44 = vsub.f32 1.0, %v487_v43 }
 0xbf7   :  { %v489_v45 = vmul.f32 %v914_v42, %v488_v44 }
 0xbf9   :  { %v490_v46 = vadd.f32 %v914_v42, %v489_v45 }
 0xbfb   :  { %v494_v49 = vsel %vm493_vm11, %v914_v42, %v490_v46 }
 0xbfc   :  { %v499_v52 = vsel %vm496_vm12, %v498_v50, %v494_v49 }
 0xbfd   :  { %v502_v54 = vmul.f32 %v499_v52, %v446_v23 }
 0xc5a   :  { %v505_v51 = vpop.permute.xlu0 %504 }
 0xc5b   :  { %v507_v53 = vmul.f32 %v505_v51, %v499_v52 }
 0xc5d   :  { %509 = vrot.lane.b32.xlu1 %v507_v53, %s934_s19  ;;  %v732_v53 = vpop.f32.mrf.mxu3 }
 0xccf   :  { %v510_v55 = vpop.permute.xlu1 %509 }
 0xcd0   :  { %v512_v56 = vadd.f32 %v510_v55, %v502_v54  ;;  %v1198_v54 = vld [vmem:[%s1290_s5] ss:$0 sm:$0xff] }
 0xcd2   :  { %915 = vtanh.f32 %v512_v56 }
 0xcd8   :  { %v916_v57 = vpop.eup %915 }
 0xcd9   :  { %515 = vrot.lane.b32.xlu2 %v916_v57, %s934_s19 }
 0xd33   :  { %v516_v59 = vpop.permute.xlu2 %515 }
 0xd34   :  { %v518_v60 = vmul.f32 %v516_v59, %v499_v52 }
 0xd36   :  { %520 = vrot.lane.b32.xlu0 %v518_v60, %s935_s3 }
 0xda8   :  { %v521_v61 = vpop.permute.xlu0 %520 }
 0xda9   :  { %842 = vst.msk [vmem:[%s1288_s7 + $0x28] sm:$0xff] %vm32_vm2, %v521_v61  ;;  %843 = vmatmul.msk.f32.vlgmr.msrb.gmra.mxu1 %vm32_vm2, %v521_v61 }
 0xdb0   :  { %v668_v63 = vld [vmem:[%s1288_s7 + $0x28] sm:$0xff] }
 0xdb1   :  { %849 = vmatmul.msk.f32.vlgmr.msra.gmra.mxu1 %vm32_vm2, %v663_v62  ;;  %854 = vmatmul.msk.f32.gmra.mxu3 %vm32_vm2, %v668_v63 }
 0xdb9   :  { %850 = vmatmul.msk.f32.gmra.mxu1 %vm32_vm2, %v664_v0  ;;  %v744_v0 = vld [vmem:[%s1291_s6] sm:$0xff] }
 0xdc1   :  { %851 = vmatmul.msk.f32.gmra.mxu1 %vm32_vm2, %v665_v1 }
 0xdc9   :  { %852 = vmatmul.msk.f32.gmra.mxu1 %vm32_vm2, %v666_v2 }
 0xe26   :  { %v544_v5 = vpop.f32.mrf.mxu1 }
 0xe27   :  { %v547_v6 = vadd.f32 %v544_v5, %v113_v4  ;;  %v747_v5 = vld [vmem:[%s1291_s6 + $0x18] sm:$0xff] }
 0xe29   :  { %917 = vtanh.f32 %v547_v6  ;;  %v844_v8 = vmul.f32 -1.442695, %v547_v6 }
 0xe2b   :  { %919 = vpow2.f32 %v844_v8 }
 0xe2e   :  { %v720_v42 = vpop.f32.mrf.mxu1 }
 0xe2f   :  { %v918_v7 = vpop.eup %917  ;;  %v721_v55 = vadd.f32 %v1198_v54, %v720_v42  ;;  %v751_v42 = vld [vmem:[%s1291_s6 + $0x38] sm:$0xff] }
 0xe30   :  { %570 = vrot.lane.b32.xlu1 %v918_v7, %s934_s19 }
 0xe31   :  { %v920_v10 = vpop.eup %919 }
 0xe32   :  { %v551_v12 = vadd.f32 1.0, %v920_v10 }
 0xe34   :  { %921 = vrcp.f32 %v551_v12  ;;  %v563_v18 = vand.u32 2147483648, %v551_v12  ;;  %vm557_vm13 = vweird.f32 %v551_v12  ;;  %v561_v19 = vand.u32 2147483647, %v551_v12 }
 0xe36   :  { %v564_v21 = vor.u32 1.1754944e-38, %v563_v18  ;;  %vm562_vm15 = vcmp.eq.f32.partialorder %v561_v19, 8.507059e+37  ;;  %v723_v46 = vpop.f32.mrf.mxu1  ;;  %v745_v19 = vld [vmem:[%s1291_s6 + $0x8] sm:$0xff] }
 0xe37   :  { %v724_v6 = vadd.f32 %v1198_v54, %v723_v46 }
 0xe3a   :  { %v922_v13 = vpop.eup %921 }
 0xe3b   :  { %v553_v14 = vmul.f32 %v922_v13, %v551_v12  ;;  %vm558_vm1 = vweird.f32 %v922_v13  ;;  %v750_v12 = vld [vmem:[%s1291_s6 + $0x30] sm:$0xff] }
 0xe3c   :  { %vm559_vm14 = vmor %vm557_vm13, %vm558_vm1 }
 0xe3d   :  { %v554_v15 = vsub.f32 1.0, %v553_v14 }
 0xe3e   :  { %v726_v52 = vpop.f32.mrf.mxu1 }
 0xe3f   :  { %v555_v16 = vmul.f32 %v922_v13, %v554_v15 }
 0xe41   :  { %v556_v17 = vadd.f32 %v922_v13, %v555_v16 }
 0xe43   :  { %v560_v20 = vsel %vm559_vm14, %v922_v13, %v556_v17  ;;  %v733_v13 = vadd.f32 %v1198_v54, %v732_v53 }
 0xe44   :  { %v565_v23 = vsel %vm562_vm15, %v564_v21, %v560_v20  ;;  %v727_v21 = vadd.f32 %v1198_v54, %v726_v52 }
 0xe45   :  { %v568_v25 = vmul.f32 %v565_v23, %v512_v56  ;;  %v735_v56 = vpop.f32.mrf.mxu3 }
 0xe46   :  { %v729_v57 = vpop.f32.mrf.mxu1 }
 0xe47   :  { %v730_v58 = vadd.f32 %v1198_v54, %v729_v57 }
 0xea2   :  { %v571_v22 = vpop.permute.xlu1 %570 }
 0xea3   :  { %v573_v24 = vmul.f32 %v571_v22, %v565_v23 }
 0xea5   :  { %575 = vrot.lane.b32.xlu2 %v573_v24, %s934_s19  ;;  %v748_v24 = vld [vmem:[%s1291_s6 + $0x20] sm:$0xff] }
 0xeff   :  { %v576_v26 = vpop.permute.xlu2 %575 }
 0xf00   :  { %v578_v27 = vadd.f32 %v576_v26, %v568_v25  ;;  %v736_v26 = vadd.f32 %v1198_v54, %v735_v56 }
 0xf02   :  { %923 = vtanh.f32 %v578_v27 }
 0xf08   :  { %v924_v28 = vpop.eup %923 }
 0xf09   :  { %581 = vrot.lane.b32.xlu0 %v924_v28, %s934_s19 }
 0xf7b   :  { %v582_v29 = vpop.permute.xlu0 %581 }
 0xf7c   :  { %v584_v30 = vmul.f32 %v582_v29, %v565_v23 }
 0xf7e   :  { %586 = vrot.lane.b32.xlu1 %v584_v30, %s935_s3  ;;  %v746_v30 = vld [vmem:[%s1291_s6 + $0x10] sm:$0xff] }
 0xff0   :  { %v587_v31 = vpop.permute.xlu1 %586 }
 0xff1   :  { %845 = vst.msk [vmem:[%s1288_s7 + $0x30] sm:$0xff] %vm32_vm2, %v587_v31  ;;  %846 = vmatmul.msk.f32.vlgmr.msra.gmra.mxu2 %vm32_vm2, %v587_v31 }
 0xff8   :  { %v669_v32 = vld [vmem:[%s1288_s7 + $0x30] sm:$0xff] }
 0xff9   :  { %855 = vmatmul.msk.f32.gmra.mxu3 %vm32_vm2, %v669_v32 }
0x1074   :  { %v610_v34 = vpop.f32.mrf.mxu2 }
0x1075   :  { %v613_v35 = vadd.f32 %v610_v34, %v116_v33 }
0x1077   :  { %925 = vtanh.f32 %v613_v35  ;;  %v847_v37 = vmul.f32 -1.442695, %v613_v35  ;;  %v749_v35 = vld [vmem:[%s1291_s6 + $0x28] sm:$0xff] }
0x1079   :  { %927 = vpow2.f32 %v847_v37 }
0x107c   :  { %v738_v59 = vpop.f32.mrf.mxu3 }
0x107d   :  { %v926_v36 = vpop.eup %925  ;;  %v739_v60 = vadd.f32 %v1198_v54, %v738_v59 }
0x107e   :  { %636 = vrot.lane.b32.xlu2 %v926_v36, %s934_s19 }
0x107f   :  { %v928_v38 = vpop.eup %927 }
0x1080   :  { %v617_v39 = vadd.f32 1.0, %v928_v38 }
0x1082   :  { %929 = vrcp.f32 %v617_v39  ;;  %v629_v9 = vand.u32 2147483648, %v617_v39  ;;  %vm623_vm3 = vweird.f32 %v617_v39  ;;  %v627_v11 = vand.u32 2147483647, %v617_v39 }
0x1084   :  { %v630_v48 = vor.u32 1.1754944e-38, %v629_v9  ;;  %vm628_vm5 = vcmp.eq.f32.partialorder %v627_v11, 8.507059e+37 }
0x1088   :  { %v930_v40 = vpop.eup %929 }
0x1089   :  { %v619_v41 = vmul.f32 %v930_v40, %v617_v39  ;;  %vm624_vm0 = vweird.f32 %v930_v40 }
0x108a   :  { %vm625_vm4 = vmor %vm623_vm3, %vm624_vm0 }
0x108b   :  { %v620_v43 = vsub.f32 1.0, %v619_v41 }
0x108d   :  { %v621_v44 = vmul.f32 %v930_v40, %v620_v43 }
0x108f   :  { %v622_v45 = vadd.f32 %v930_v40, %v621_v44 }
0x1091   :  { %v626_v47 = vsel %vm625_vm4, %v930_v40, %v622_v45 }
0x1092   :  { %v631_v50 = vsel %vm628_vm5, %v630_v48, %v626_v47 }
0x1093   :  { %v634_v61 = vmul.f32 %v631_v50, %v578_v27 }
0x10d8   :  { %v637_v49 = vpop.permute.xlu2 %636 }
0x10d9   :  { %v639_v51 = vmul.f32 %v637_v49, %v631_v50 }
0x10db   :  { %641 = vrot.lane.b32.xlu0 %v639_v51, %s934_s19 }
0x10e3   :  { %760 = vrot.lane.b32.xlu0 %v721_v55, %s936_s22 }
0x10eb   :  { %766 = vrot.lane.b32.xlu0 %v730_v58, %s936_s22 }
0x10f3   :  { %772 = vrot.lane.b32.xlu0 %v739_v60, %s936_s22 }
0x114d   :  { %v642_v62 = vpop.permute.xlu0 %641 }
0x114e   :  { %v644_v63 = vadd.f32 %v642_v62, %v634_v61 }
0x1150   :  { %931 = vtanh.f32 %v644_v63 }
0x1155   :  { %v761_v1 = vpop.permute.xlu0 %760 }
0x1156   :  { %v932_v2 = vpop.eup %931  ;;  %v784_v3 = vmul.f32 %v761_v1, %v744_v0 }
0x1157   :  { %647 = vrot.lane.b32.xlu1 %v932_v2, %s934_s19 }
0x1158   :  { %v792_v4 = vadd.f32 %v784_v3, %v721_v55 }
0x115a   :  { %801 = vst.msk [vmem:[%s1292_s8] sm:$0xff] %vm800_vm6, %v792_v4 }
0x115d   :  { %v767_v7 = vpop.permute.xlu0 %766 }
0x115e   :  { %v787_v8 = vmul.f32 %v767_v7, %v747_v5 }
0x115f   :  { %762 = vrot.lane.b32.xlu1 %v724_v6, %s936_s22 }
0x1160   :  { %v795_v10 = vadd.f32 %v787_v8, %v730_v58 }
0x1162   :  { %804 = vst.msk [vmem:[%s1292_s8 + $0x18] sm:$0xff] %vm800_vm6, %v795_v10 }
0x1165   :  { %v773_v14 = vpop.permute.xlu0 %772 }
0x1166   :  { %v790_v15 = vmul.f32 %v773_v14, %v750_v12 }
0x1167   :  { %768 = vrot.lane.b32.xlu1 %v733_v13, %s936_s22 }
0x1168   :  { %v798_v16 = vadd.f32 %v790_v15, %v739_v60 }
0x116a   :  { %807 = vst.msk [vmem:[%s1292_s8 + $0x30] sm:$0xff] %vm800_vm6, %v798_v16 }
0x11c9   :  { %v648_v17 = vpop.permute.xlu1 %647 }
0x11ca   :  { %v650_v18 = vmul.f32 %v648_v17, %v631_v50 }
0x11cc   :  { %652 = vrot.lane.b32.xlu2 %v650_v18, %s935_s3 }
0x11d1   :  { %v763_v20 = vpop.permute.xlu1 %762 }
0x11d2   :  { %v785_v22 = vmul.f32 %v763_v20, %v745_v19 }
0x11d4   :  { %v793_v23 = vadd.f32 %v785_v22, %v724_v6  ;;  %764 = vrot.lane.b32.xlu2 %v727_v21, %s936_s22 }
0x11d6   :  { %802 = vst.msk [vmem:[%s1292_s8 + $0x8] sm:$0xff] %vm800_vm6, %v793_v23 }
0x11d9   :  { %v769_v25 = vpop.permute.xlu1 %768 }
0x11da   :  { %v788_v27 = vmul.f32 %v769_v25, %v748_v24 }
0x11dc   :  { %v796_v28 = vadd.f32 %v788_v27, %v733_v13  ;;  %770 = vrot.lane.b32.xlu2 %v736_v26, %s936_s22 }
0x11de   :  { %805 = vst.msk [vmem:[%s1292_s8 + $0x20] sm:$0xff] %vm800_vm6, %v796_v28 }
0x11e4   :  { %659 = vrot.lane.b32.xlu2 %v644_v63, %s937_s15 }
0x1226   :  { %v653_v29 = vpop.permute.xlu2 %652 }
0x1227   :  { %848 = vst.msk [vmem:[%s1288_s7 + $0x38] sm:$0xff] %vm32_vm2, %v653_v29 }
0x1228   :  { %657 = vst.msk [vmem:[#allocation2] sm:$0xff] %vm32_vm2, %v653_v29 }
0x122e   :  { %v765_v31 = vpop.permute.xlu2 %764  ;;  %v670_v32 = vld [vmem:[%s1288_s7 + $0x38] sm:$0xff] }
0x122f   :  { %v786_v33 = vmul.f32 %v765_v31, %v746_v30  ;;  %856 = vmatmul.msk.f32.gmra.mxu3 %vm32_vm2, %v670_v32 }
0x1231   :  { %v794_v34 = vadd.f32 %v786_v33, %v727_v21 }
0x1233   :  { %803 = vst.msk [vmem:[%s1292_s8 + $0x10] sm:$0xff] %vm800_vm6, %v794_v34 }
0x1236   :  { %v771_v36 = vpop.permute.xlu2 %770 }
0x1237   :  { %v789_v37 = vmul.f32 %v771_v36, %v749_v35 }
0x1239   :  { %v797_v38 = vadd.f32 %v789_v37, %v736_v26 }
0x123b   :  { %806 = vst.msk [vmem:[%s1292_s8 + $0x28] sm:$0xff] %vm800_vm6, %v797_v38 }
0x123e   :  { %v660_v39 = vpop.permute.xlu2 %659 }
0x123f   :  { %662 = vst.msk [vmem:[#allocation3] sm:$0xff] %vm32_vm2, %v660_v39 }
0x12b2   :  { %v741_v40 = vpop.f32.mrf.mxu3 }
0x12b3   :  { %v742_v41 = vadd.f32 %v1198_v54, %v741_v40 }
0x12b5   :  { %774 = vrot.lane.b32.xlu1 %v742_v41, %s936_s22 }
0x1327   :  { %v775_v43 = vpop.permute.xlu1 %774 }
0x1328   :  { %v791_v44 = vmul.f32 %v775_v43, %v751_v42 }
0x132a   :  { %v799_v45 = vadd.f32 %v791_v44, %v742_v41 }
0x132c   :  { %808 = vst.msk [vmem:[%s1292_s8 + $0x38] sm:$0xff] %vm800_vm6, %v799_v45 }

</bundles_post_ra>
